<compile_context>
chip_gen: v6e
topology: v6e:2x2x1
jax: 0.10.0
libtpu: 0.0.40
codegen_flags: <defaults>
</compile_context>

<pallas_src>
import functools

import jax
import jax.numpy as jnp
from jax import lax
from jax.experimental import pallas as pl
from jax.experimental.pallas import tpu as pltpu

N_EMBEDDINGS = 256   # codebook size (module default)
LANES = 128
SUBLANES = 8
ROW_TILE = 128       # rows of 128 lanes per grid step (16K latent scalars)
SUB_ROWS = 32        # rows per inner K-loop working set (vreg-pressure cap)

_GOLD = 0x9E3779B9   # per-code counter stride
_MIX1 = 0x85EBCA6B   # murmur3 fmix32 constants
_MIX2 = 0xC2B2AE35
_SEED1 = 0xCC9E2D51  # splitmix-style seed mixing constants
_SEED2 = 0x1B873593


def _cdiv(a, b):
    return -(-a // b)


def _round_up(a, b):
    return _cdiv(a, b) * b


def _fmix32(x):
    """murmur3 finalizer — counter-based PRNG mixing, pure VPU integer ops."""
    x = x ^ (x >> 16)
    x = x * jnp.uint32(_MIX1)
    x = x ^ (x >> 13)
    x = x * jnp.uint32(_MIX2)
    x = x ^ (x >> 16)
    return x


def _discretize_kernel(seed_ref, cb_ref, z_ref, idx_ref, sel_ref,
                       *, n_codes, sub_rows, noisy, inv_noise_scale):
    """One grid step: (tr, 128) latent scalars vs all K codebook entries.

    inputs : seed (1,) SMEM int32, codebook (K,) SMEM f32 (pre-scaled by 1/ns
             when noisy), z (tr, 128) VMEM f32 (scaled in-kernel when noisy)
    outputs: idx (tr,128) int32 = argmin_k |z - c_k|          (encoding_indices)
             sel (tr,128) int32 = argmax_k (gumbel_k - |z-c_k|) (hard selection)
    The inner sub-loop works on (sub_rows, 128) chunks to keep the K-loop
    carry + temporaries comfortably under the 64-vreg budget.
    """
    tr, lanes = z_ref.shape
    n_sub = tr // sub_rows
    tile_row0 = pl.program_id(0) * tr

    if noisy:
        # splitmix-style seed mix (scalar unit, hoisted once per grid step);
        # combined with the per-element *global* counter below, tiles get
        # decorrelated streams without relying on consecutive raw seeds.
        seed_u = (seed_ref[0].astype(jnp.uint32) * jnp.uint32(_SEED1)
                  + jnp.uint32(_SEED2))

    def sub_body(s, carry_unused):
        r0 = pl.multiple_of(s * sub_rows, sub_rows)
        z = z_ref[pl.ds(r0, sub_rows), :]
        if noisy and inv_noise_scale != 1.0:
            # noise_scale folded once per tile (codebook pre-scaled in the
            # wrapper): no per-(element, code) scale multiply in the K loop.
            z = z * jnp.float32(inv_noise_scale)

        if noisy:
            row_i = lax.broadcasted_iota(jnp.int32, (sub_rows, lanes), 0)
            lane_i = lax.broadcasted_iota(jnp.int32, (sub_rows, lanes), 1)
            gid = (tile_row0 + r0 + row_i) * lanes + lane_i   # global element id
            base = gid.astype(jnp.uint32) + seed_u            # per-element counter

        inf_f = jnp.full((sub_rows, lanes), jnp.inf, jnp.float32)
        zero_i = jnp.zeros((sub_rows, lanes), jnp.int32)
        if noisy:
            # carry: (best score = log(-log u)+d, its code, best dist, its code)
            init = (inf_f, zero_i, inf_f, zero_i)
        else:
            init = (inf_f, zero_i)

        def code_body(k, carry):
            c = cb_ref[k]                       # SMEM scalar codebook entry
            d = jnp.abs(z - c)                  # |z - c_k|; logits = -d
            if noisy:
                best_score, best_sel, best_dist, best_idx = carry
                # counter-hash Gumbel: u ~ U(0,1); in hard mode
                # argmax_k(gumbel_k + logits_k) == argmin_k(log(-log u_k) + d_k)
                x = _fmix32(base + (k + 1).astype(jnp.uint32) * jnp.uint32(_GOLD))
                # exponent-OR trick: f in [1,2) -> u = f - (1 - 2^-24) in (0,1)
                f = lax.bitcast_convert_type(
                    (x >> 9) | jnp.uint32(0x3F800000), jnp.float32)
                u = f - jnp.float32(1.0 - 2.0 ** -24)
                score = jnp.log(-jnp.log(u)) + d
                take_s = score < best_score     # strict <: first max wins (torch)
                take_d = d < best_dist          # strict <: first min wins (torch)
                return (jnp.where(take_s, score, best_score),
                        jnp.where(take_s, k, best_sel),
                        jnp.where(take_d, d, best_dist),
                        jnp.where(take_d, k, best_idx))
            else:
                best_dist, best_idx = carry
                take_d = d < best_dist
                return (jnp.where(take_d, d, best_dist),
                        jnp.where(take_d, k, best_idx))

        out = lax.fori_loop(0, n_codes, code_body, init)
        if noisy:
            _, best_sel, _, best_idx = out
        else:
            _, best_idx = out
            best_sel = best_idx

        idx_ref[pl.ds(r0, sub_rows), :] = best_idx
        sel_ref[pl.ds(r0, sub_rows), :] = best_sel
        return carry_unused

    lax.fori_loop(0, n_sub, sub_body, jnp.int32(0))


def gumbel_softmax_discretize(z, codebook, seed=0, noise_scale=1.0):
    """Pallas-backed GumbelSoftmaxDiscretization.forward (eval mode: hard=True).

    z: [B, num_ws, w_dim] float32 latents
    codebook: [K] float32 (linspace(-1, 1, K) in the module)
    seed: int seed for the in-kernel counter-hash PRNG
    noise_scale: 1.0 for Gumbel sampling, 0.0 for deterministic nearest-code
                 quantization (used by the correctness cross-check).  The value
                 is static, so each setting traces a specialized kernel.
    returns (discretized [B, num_ws, w_dim], perplexity scalar,
             encoding_indices [N] int32)
    """
    B, num_ws, w_dim = z.shape
    N = B * num_ws * w_dim
    K = int(codebook.shape[0])

    noisy = float(noise_scale) != 0.0
    inv_ns = (1.0 / float(noise_scale)) if noisy else 1.0

    # lane-dense layout: rows of 128 lanes, padded to sublane-aligned tiles so
    # every load/store in the kernel is a full (8,128)-aligned block.
    rows = _cdiv(N, LANES)
    rows8 = _round_up(rows, SUBLANES)
    if rows8 >= ROW_TILE:
        tr, sub = ROW_TILE, SUB_ROWS
    else:
        tr = rows8
        sub = SUB_ROWS if tr % SUB_ROWS == 0 else SUBLANES
    grid = _cdiv(rows8, tr)
    rows_pad = grid * tr
    n_pad = rows_pad * LANES

    z_flat = jnp.pad(z.reshape(-1).astype(jnp.float32), (0, n_pad - N))
    z2 = z_flat.reshape(rows_pad, LANES)

    cb = codebook.astype(jnp.float32).reshape(-1)
    cb_kernel = cb * jnp.float32(inv_ns) if (noisy and inv_ns != 1.0) else cb
    seed_arr = jnp.full((1,), seed, dtype=jnp.int32)

    kernel = functools.partial(_discretize_kernel, n_codes=K, sub_rows=sub,
                               noisy=noisy, inv_noise_scale=inv_ns)

    idx, sel = pl.pallas_call(
        kernel,
        grid=(grid,),
        in_specs=[
            pl.BlockSpec(memory_space=pltpu.MemorySpace.SMEM),   # seed
            pl.BlockSpec(memory_space=pltpu.MemorySpace.SMEM),   # codebook
            pl.BlockSpec((tr, LANES), lambda i: (i, 0)),         # z rows
        ],
        out_specs=[
            pl.BlockSpec((tr, LANES), lambda i: (i, 0)),         # argmin distance
            pl.BlockSpec((tr, LANES), lambda i: (i, 0)),         # gumbel argmax
        ],
        out_shape=[
            jax.ShapeDtypeStruct((rows_pad, LANES), jnp.int32),
            jax.ShapeDtypeStruct((rows_pad, LANES), jnp.int32),
        ],
        compiler_params=pltpu.CompilerParams(
            dimension_semantics=("parallel",)),  # independent steps; both v7x
                                                 # cores engage when grid >= 2
    )(seed_arr, cb_kernel, z2)

    idx_valid = idx.reshape(-1)[:N]
    sel_valid = sel.reshape(-1)[:N]

    # exact codebook values via a K-entry gather (replaces the old f32 output).
    discretized = cb[sel_valid].reshape(B, num_ws, w_dim)

    # avg_probs / entropy / perplexity finalize (tiny 1xK reduction) in JAX.
    counts = jnp.zeros((K,), jnp.float32).at[sel_valid].add(1.0)
    avg_probs = counts / jnp.float32(N)
    perplexity = jnp.exp(-jnp.sum(avg_probs * jnp.log(avg_probs + 1e-10)))
    return discretized, perplexity, idx_valid


def _ref_hard_quantize(z, codebook):
    """Pure-JAX reference of the hard (eval-mode, zero-noise) forward."""
    N = z.size
    flat = z.reshape(N, 1)
    dist = jnp.abs(flat - codebook[None, :])
    idx = jnp.argmin(dist, axis=1)
    disc = codebook[idx].reshape(z.shape)
    onehot = jax.nn.one_hot(idx, codebook.shape[0], dtype=jnp.float32)
    avg = onehot.mean(0)
    perp = jnp.exp(-jnp.sum(avg * jnp.log(avg + 1e-10)))
    return disc, perp, idx


class PallasGumbelSoftmaxCompressor:
    """Eval-mode forward of GumbelSoftmaxCompressor with a Pallas discretizer."""

    def __init__(self, key, in_shape=(2, 4, 16, 16), num_ws=8, w_dim=32,
                 n_embeddings=N_EMBEDDINGS, temperature=1.0):
        B, C, H, W = in_shape
        self.num_ws, self.w_dim = num_ws, w_dim
        d_in = C * H * W
        d_lat = num_ws * w_dim
        k1, k2 = jax.random.split(key)
        # TODO(synk): the real HVAE encoder / StyleGAN3 generator are external
        # modules not given in the source; stubbed as deterministic linear maps.
        self.enc_w = jax.random.normal(k1, (d_in, d_lat), jnp.float32) * 0.02
        self.gen_w = jax.random.normal(k2, (d_lat, d_in), jnp.float32) * 0.02
        # GumbelSoftmaxDiscretization buffers/params. In hard (eval) mode the
        # forward *value* of F.gumbel_softmax is temperature-invariant, so the
        # kernel does not consume log_temperature (kept for parameter parity).
        self.codebook = jnp.linspace(-1.0, 1.0, n_embeddings).astype(jnp.float32)
        self.log_temperature = jnp.ones((1,), jnp.float32) * jnp.log(jnp.float32(temperature))

    def forward(self, x, seed=0):
        B, C, H, W = x.shape
        # encoder stub: returns (w_plus, means, _) with means == w_plus
        lat = x.reshape(B, -1) @ self.enc_w
        w_plus = lat.reshape(B, self.num_ws, self.w_dim)
        means = w_plus
        w_discrete, perplexity, _ = gumbel_softmax_discretize(
            means, self.codebook, seed=seed, noise_scale=1.0)
        # generator.synthesis stub: linear map back to image space
        img = (w_discrete.reshape(B, -1) @ self.gen_w).reshape(B, C, H, W)
        # training_resolution is None -> no bilinear resize needed
        return img, w_plus, w_discrete, perplexity


if __name__ == "__main__":
    key = jax.random.PRNGKey(0)
    k_params, k_x = jax.random.split(key)

    B, C, H, W = 2, 4, 16, 16
    x = jax.random.normal(k_x, (B, C, H, W), jnp.float32)

    model = PallasGumbelSoftmaxCompressor(k_params, in_shape=(B, C, H, W),
                                          num_ws=8, w_dim=32,
                                          n_embeddings=N_EMBEDDINGS,
                                          temperature=1.0)

    img, w_plus, w_discrete, perplexity = model.forward(x, seed=1234)
    jax.block_until_ready((img, w_plus, w_discrete, perplexity))

    means = (x.reshape(B, -1) @ model.enc_w).reshape(B, 8, 32)
    K = int(model.codebook.shape[0])

    # 1) deterministic cross-check: noise_scale=0 specializes the kernel to
    #    exact nearest-code quantization, reproducible by a pure-JAX reference.
    ref_disc, ref_perp, ref_idx = _ref_hard_quantize(means, model.codebook)
    pal_disc, pal_perp, pal_idx = gumbel_softmax_discretize(
        means, model.codebook, seed=0, noise_scale=0.0)
    assert jnp.allclose(pal_disc, ref_disc, atol=1e-6)
    assert jnp.array_equal(pal_idx, ref_idx)
    assert jnp.allclose(pal_perp, ref_perp, atol=1e-3, rtol=1e-4)

    # 2) stochastic forward sanity checks (in-kernel counter-hash Gumbel noise;
    #    the noise stream intentionally differs from torch/jax.random.gumbel).
    noisy_disc, noisy_perp, noisy_idx = gumbel_softmax_discretize(
        means, model.codebook, seed=1234, noise_scale=1.0)
    assert jnp.array_equal(noisy_idx, ref_idx)          # encoding_indices are noise-free argmin
    gap = jnp.max(jnp.min(jnp.abs(noisy_disc.reshape(-1, 1) - model.codebook[None, :]), axis=1))
    assert float(gap) < 1e-6                            # every output is a codebook entry
    assert bool(jnp.isfinite(noisy_perp))
    assert 0.99 <= float(noisy_perp) <= K + 1e-3

    assert img.shape == x.shape
    assert w_plus.shape == (B, 8, 32) and w_discrete.shape == (B, 8, 32)
    assert bool(jnp.isfinite(perplexity))

    print("KERNEL_OK")
</pallas_src>

<mosaic_0001>
module attributes {stable_mosaic.version = 11 : i64} {
  func.func @_discretize_kernel(%arg0: i32, %arg1: memref<1xi32, #tpu.memory_space<smem>>, %arg2: memref<256xf32, #tpu.memory_space<smem>>, %arg3: memref<8x128xf32, #tpu.memory_space<vmem>>, %arg4: memref<8x128xi32, #tpu.memory_space<vmem>>, %arg5: memref<8x128xi32, #tpu.memory_space<vmem>>) attributes {dimension_semantics = [#tpu.dimension_semantics<parallel>], iteration_bounds = array<i64: 1>, scalar_prefetch = 0 : i64, scratch_operands = 0 : i64, tpu.core_type = #tpu.core_type<tc>, window_params = [{transform_indices = @transform_0, window_bounds = array<i64: 1>}, {transform_indices = @transform_1, window_bounds = array<i64: 256>}, {transform_indices = @transform_2, window_bounds = array<i64: 8, 128>}, {transform_indices = @transform_3, window_bounds = array<i64: 8, 128>}, {transform_indices = @transform_4, window_bounds = array<i64: 8, 128>}]} {
    %c8_i32 = arith.constant 8 : i32
    %0 = arith.muli %arg0, %c8_i32 : i32
    %c0 = arith.constant 0 : index
    %1 = memref.load %arg1[%c0] : memref<1xi32, #tpu.memory_space<smem>>
    %c-862048943_i32 = arith.constant -862048943 : i32
    %2 = arith.muli %1, %c-862048943_i32 : i32
    %c461845907_i32 = arith.constant 461845907 : i32
    %3 = arith.addi %2, %c461845907_i32 : i32
    %c0_i32 = arith.constant 0 : i32
    %c8_i32_0 = arith.constant 8 : i32
    %4 = arith.muli %c0_i32, %c8_i32_0 : i32
    %5 = tpu.assume_multiple %4, 8 : i32
    %6 = arith.index_cast %5 : i32 to index
    %c0_1 = arith.constant 0 : index
    %7 = vector.load %arg3[%6, %c0_1] : memref<8x128xf32, #tpu.memory_space<vmem>>, vector<8x128xf32>
    %8 = tpu.iota {dimensions = array<i32: 0>} : vector<8x128xi32>
    %9 = tpu.iota {dimensions = array<i32: 1>} : vector<8x128xi32>
    %10 = arith.addi %0, %5 : i32
    %11 = vector.broadcast %10 : i32 to vector<8x128xi32>
    %12 = arith.addi %11, %8 : vector<8x128xi32>
    %c128_i32 = arith.constant 128 : i32
    %13 = vector.broadcast %c128_i32 : i32 to vector<8x128xi32>
    %14 = arith.muli %12, %13 : vector<8x128xi32>
    %15 = arith.addi %14, %9 : vector<8x128xi32>
    %16 = vector.broadcast %3 : i32 to vector<8x128xi32>
    %17 = arith.addi %15, %16 : vector<8x128xi32>
    %cst = arith.constant 0x7F800000 : f32
    %18 = vector.broadcast %cst : f32 to vector<8x128xf32>
    %c0_i32_2 = arith.constant 0 : i32
    %19 = vector.broadcast %c0_i32_2 : i32 to vector<8x128xi32>
    %c0_i32_3 = arith.constant 0 : i32
    %c256_i32 = arith.constant 256 : i32
    %20 = arith.addi %c0_i32_3, %c256_i32 : i32
    %c1_i32 = arith.constant 1 : i32
    %21:4 = scf.for %arg6 = %c0_i32_3 to %20 step %c1_i32 iter_args(%arg7 = %18, %arg8 = %19, %arg9 = %18, %arg10 = %19) -> (vector<8x128xf32>, vector<8x128xi32>, vector<8x128xf32>, vector<8x128xi32>)  : i32 {
      %26 = arith.index_cast %arg6 : i32 to index
      %27 = memref.load %arg2[%26] : memref<256xf32, #tpu.memory_space<smem>>
      %28 = vector.broadcast %27 : f32 to vector<8x128xf32>
      %29 = arith.subf %7, %28 : vector<8x128xf32>
      %30 = math.absf %29 : vector<8x128xf32>
      %c1_i32_8 = arith.constant 1 : i32
      %31 = arith.addi %arg6, %c1_i32_8 : i32
      %c-1640531527_i32 = arith.constant -1640531527 : i32
      %32 = arith.muli %31, %c-1640531527_i32 : i32
      %33 = vector.broadcast %32 : i32 to vector<8x128xi32>
      %34 = arith.addi %17, %33 : vector<8x128xi32>
      %c16_i32 = arith.constant 16 : i32
      %35 = vector.broadcast %c16_i32 : i32 to vector<8x128xi32>
      %36 = arith.shrui %34, %35 : vector<8x128xi32>
      %37 = arith.xori %34, %36 : vector<8x128xi32>
      %c-2048144789_i32 = arith.constant -2048144789 : i32
      %38 = vector.broadcast %c-2048144789_i32 : i32 to vector<8x128xi32>
      %39 = arith.muli %37, %38 : vector<8x128xi32>
      %c13_i32 = arith.constant 13 : i32
      %40 = vector.broadcast %c13_i32 : i32 to vector<8x128xi32>
      %41 = arith.shrui %39, %40 : vector<8x128xi32>
      %42 = arith.xori %39, %41 : vector<8x128xi32>
      %c-1028477387_i32 = arith.constant -1028477387 : i32
      %43 = vector.broadcast %c-1028477387_i32 : i32 to vector<8x128xi32>
      %44 = arith.muli %42, %43 : vector<8x128xi32>
      %c16_i32_9 = arith.constant 16 : i32
      %45 = vector.broadcast %c16_i32_9 : i32 to vector<8x128xi32>
      %46 = arith.shrui %44, %45 : vector<8x128xi32>
      %47 = arith.xori %44, %46 : vector<8x128xi32>
      %c9_i32 = arith.constant 9 : i32
      %48 = vector.broadcast %c9_i32 : i32 to vector<8x128xi32>
      %49 = arith.shrui %47, %48 : vector<8x128xi32>
      %c1065353216_i32 = arith.constant 1065353216 : i32
      %50 = vector.broadcast %c1065353216_i32 : i32 to vector<8x128xi32>
      %51 = arith.ori %49, %50 : vector<8x128xi32>
      %52 = tpu.bitcast %51 : vector<8x128xi32> -> vector<8x128xf32>
      %cst_10 = arith.constant 0.99999994 : f32
      %53 = vector.broadcast %cst_10 : f32 to vector<8x128xf32>
      %54 = arith.subf %52, %53 : vector<8x128xf32>
      %55 = math.log %54 : vector<8x128xf32>
      %cst_11 = arith.constant 0.000000e+00 : f32
      %56 = vector.broadcast %cst_11 : f32 to vector<8x128xf32>
      %57 = arith.subf %56, %55 : vector<8x128xf32>
      %58 = math.log %57 : vector<8x128xf32>
      %59 = arith.addf %58, %30 : vector<8x128xf32>
      %60 = arith.cmpf olt, %59, %arg7 : vector<8x128xf32>
      %61 = arith.cmpf olt, %30, %arg9 : vector<8x128xf32>
      %62 = arith.select %60, %59, %arg7 : vector<8x128xi1>, vector<8x128xf32>
      %63 = vector.broadcast %arg6 : i32 to vector<8x128xi32>
      %64 = arith.select %60, %63, %arg8 : vector<8x128xi1>, vector<8x128xi32>
      %65 = arith.select %61, %30, %arg9 : vector<8x128xi1>, vector<8x128xf32>
      %66 = vector.broadcast %arg6 : i32 to vector<8x128xi32>
      %67 = arith.select %61, %66, %arg10 : vector<8x128xi1>, vector<8x128xi32>
      scf.yield %62, %64, %65, %67 : vector<8x128xf32>, vector<8x128xi32>, vector<8x128xf32>, vector<8x128xi32>
    }
    %c256_i32_4 = arith.constant 256 : i32
    %22 = arith.index_cast %5 : i32 to index
    %c0_5 = arith.constant 0 : index
    %23 = vector.load %arg4[%22, %c0_5] : memref<8x128xi32, #tpu.memory_space<vmem>>, vector<8x128xi32>
    tpu.vector_store %arg4[%22, %c0_5], %21#3 {strides = array<i32>} : memref<8x128xi32, #tpu.memory_space<vmem>>, vector<8x128xi32>,
    %24 = arith.index_cast %5 : i32 to index
    %c0_6 = arith.constant 0 : index
    %25 = vector.load %arg5[%24, %c0_6] : memref<8x128xi32, #tpu.memory_space<vmem>>, vector<8x128xi32>
    tpu.vector_store %arg5[%24, %c0_6], %21#1 {strides = array<i32>} : memref<8x128xi32, #tpu.memory_space<vmem>>, vector<8x128xi32>,
    %c1_i32_7 = arith.constant 1 : i32
    return
  }
  func.func @transform_0(%arg0: i32) -> i32 {
    %c0_i32 = arith.constant 0 : i32
    %c0_i32_0 = arith.constant 0 : i32
    return %c0_i32 : i32
  }
  func.func @transform_1(%arg0: i32) -> i32 {
    %c0_i32 = arith.constant 0 : i32
    %c0_i32_0 = arith.constant 0 : i32
    return %c0_i32 : i32
  }
  func.func @transform_2(%arg0: i32) -> (i32, i32) {
    %c0_i32 = arith.constant 0 : i32
    %c0_i32_0 = arith.constant 0 : i32
    return %arg0, %c0_i32 : i32, i32
  }
  func.func @transform_3(%arg0: i32) -> (i32, i32) {
    %c0_i32 = arith.constant 0 : i32
    %c0_i32_0 = arith.constant 0 : i32
    return %arg0, %c0_i32 : i32, i32
  }
  func.func @transform_4(%arg0: i32) -> (i32, i32) {
    %c0_i32 = arith.constant 0 : i32
    %c0_i32_0 = arith.constant 0 : i32
    return %arg0, %c0_i32 : i32, i32
  }
}

</mosaic_0001>

<bundles_post_ra>
// kernel: tpu_custom_call.1
= control target key start
LH: loop header
LB: loop body
LE: loop exit
PB: predicated region body
PF: predicated region fallthrough
CT: control target
= control target key end

     0   :  { %11 = vsyncpa [#allocation6], 0  ;;  %s380_s0 = inlined_call_operand.<no memory space> [shape: s32[1], index: 0, kind: input, shape index: {}]   ;;  %s381_s1 = inlined_call_operand.vmem [shape: f32[256], index: 1, kind: input, shape index: {}]   ;;  %s382_s2 = inlined_call_operand.hbm [shape: f32[8,128], index: 2, kind: input, shape index: {}]   ;;  %s383_s3 = inlined_call_operand.hbm [shape: s32[8,128], index: 3, kind: output, shape index: {0}]   ;;  %s384_s4 = inlined_call_operand.hbm [shape: s32[8,128], index: 4, kind: output, shape index: {1}]  }
   0x1   :  { %12 = vsyncpa [#allocation4], 0 }
   0x2   :  { %13 = vsyncpa [#allocation5], 0 }
   0x3   :  { %14 = vsyncpa [#allocation10], 0  ;;  %s23_s17 = sshll.u32 %s381_s1, 4  ;;  %s24_s17 = int_to_ptr.vmem [resolvable:$true] %s23_s17 }
   0x4   :  { %s201_s18 = scalar_lea.vmem %s24_s17, 32  ;;  %p206_p1 = scmp.lt.s32.totalorder %s24_s17, %s24_s17 }
   0x5   :  { %p202_p0 = scmp.ne.s32.totalorder %s24_s17, %s201_s18  ;;  %p207_p2 = scmp.lt.s32.totalorder %s201_s18, %s201_s18 }
   0x7   :  { %p208_p3 = por %p207_p2, %p206_p1 }
   0x9   :  { %p209_p4 = pnand %p208_p3, %p202_p0 }
   0xb   :  { %212 = shalt.err (!%p209_p4)
}
   0xc   :  { %s321_s19 = smov [#allocation3]   ;;  %s322_s20 = smov [#allocation7]  }
   0xd   :  { %26 = dma.vmem_to_smem %s24_s17, 32, %s321_s19, [#allocation6]  }
   0xe   :  { %s33_s21 = sshll.u32 %s322_s20, 4  ;;  %s34_s21 = int_to_ptr.vmem [resolvable:$true] %s33_s21 }
   0xf   :  { %s221_s22 = scalar_lea.vmem %s34_s21, 128  ;;  %p226_p6 = scmp.lt.s32.totalorder %s34_s21, %s34_s21 }
  0x10   :  { %p222_p5 = scmp.ne.s32.totalorder %s34_s21, %s221_s22  ;;  %p227_p7 = scmp.lt.s32.totalorder %s221_s22, %s221_s22 }
  0x12   :  { %p228_p8 = por %p227_p7, %p226_p6 }
  0x14   :  { %p229_p9 = pnand %p228_p8, %p222_p5 }
  0x16   :  { %232 = shalt.err (!%p229_p9)
}
  0x17   :  { %36 = dma.hbm_to_vmem [thread:$0]  %s382_s2, 128, %s34_s21, [#allocation4]  }
  0x18   :  { %293 = dma.done.wait [#allocation6], 32  }
  0x19   :  { %294 = vsyncadd [#allocation6], 4294967264 }
  0x1a   :  { %295 = dma.done.wait [#allocation4], 128  }
  0x1b   :  { %296 = vsyncadd [#allocation4], 4294967168 }
  0x1c   :  { %43 = sfence }
  0x1d   :  { %s46_s26 = smul.u32 3432918353, %s380_s0  ;;  %v48_v0 = vld [vmem:[#allocation7] sm:$0xff]  ;;  %v49_v1 = vlaneseq  ;;  %v301_v8 = vmov 0   ;;  %v305_v9 = vmov inf   ;;  %v309_v10 = vmov 0  }
  0x1e   :  { %v313_v11 = vmov inf   ;;  %s359_s2 = smov 0  }
  0x1f   :  { %s47_s27 = sadd.s32 461845907, %s46_s26  ;;  %v50_v2 = vshrl.u32 %v49_v1, 7  ;;  %v52_v3 = vand.u32 127, %v49_v1 }
  0x20   :  { %v58_v5 = vstv %s47_s27 }
  0x21   :  { %v56_v4 = vmul.u32 128, %v50_v2 }
  0x23   :  { %v57_v6 = vadd.s32 %v56_v4, %v52_v3 }
  0x25   :  { %v59_v7 = vadd.s32 %v58_v5, %v57_v6 }
  0x26 LB: > { %s70_s0 = sld [smem:[#allocation3 + %s319_s2]]  ;;  %s366_s28 = sadd.s32 1, %s319_s2   ;;  %v99_v19 = vstv %s319_s2  ;;  %s319_s2 = sphi %s359_s2, %s385_s2   ;;  %v315_v11 = vphi %v313_v11, %v98_v11   ;;  %v311_v10 = vphi %v309_v10, %v310_v10   ;;  %v307_v9 = vphi %v305_v9, %v101_v9   ;;  %v303_v8 = vphi %v301_v8, %v302_v8  }
  0x27   : > { %s75_s29 = smul.u32 2654435769, %s366_s28  ;;  %p62_p10 = scmp.ge.s32.totalorder %s366_s28, 256  }
  0x28   : > { %s385_s2 = smov %s366_s28  ;;  %s323_s30 = smov (%p62_p10), [#allocation8]  }
  0x29   : > { %v76_v12 = vstv %s75_s29  ;;  %s111_s5 = sshll.u32 (%p62_p10), %s323_s30, 4  ;;  %s324_s6 = smov (%p62_p10), [#allocation9]   ;;  %s112_s5 = int_to_ptr.vmem [resolvable:$true] %s111_s5 }
  0x2a   : > { %v77_v13 = vadd.s32 %v76_v12, %v59_v7  ;;  %s121_s7 = sshll.u32 (%p62_p10), %s324_s6, 4  ;;  %s233_s8 = scalar_lea.vmem (%p62_p10), %s112_s5, 128  ;;  %s122_s7 = int_to_ptr.vmem [resolvable:$true] %s121_s7 }
  0x2b   :  { %p234_p11 = scmp.ne.s32.totalorder (%p62_p10), %s112_s5, %s233_s8  ;;  %p238_p12 = scmp.lt.s32.totalorder (%p62_p10), %s112_s5, %s112_s5 }
  0x2c   : > { %v71_v14 = vstv %s70_s0  ;;  %v78_v15 = vshrl.u32 %v77_v13, 16  ;;  %p239_p13 = scmp.lt.s32.totalorder (%p62_p10), %s233_s8, %s233_s8 }
  0x2d   : > { %v72_v16 = vsub.f32 %v48_v0, %v71_v14 }
  0x2e   : > { %v79_v17 = vxor.u32 %v78_v15, %v77_v13  ;;  %p240_p0 = por (%p62_p10), %p239_p13, %p238_p12 }
  0x2f   : > { %v73_v18 = vand.u32 2147483647, %v72_v16 }
  0x30   : > { %v80_v20 = vmul.u32 2246822507, %v79_v17  ;;  %p241_p1 = pnand (%p62_p10), %p240_p0, %p234_p11 }
  0x31   : > { %vm97_vm0 = vcmp.lt.f32.partialorder %v73_v18, %v307_v9 }
  0x32   : > { %v81_v21 = vshrl.u32 %v80_v20, 13  ;;  %v101_v9 = vsel %vm97_vm0, %v73_v18, %v307_v9   ;;  %v102_v22 = vsel %vm97_vm0, %v99_v19, %v303_v8  }
  0x33   : > { %v302_v8 = vmov %v102_v22   ;;  %103 = vst [vmem:[#allocation8] sm:$0xff] (%p62_p10), %v102_v22 }
  0x34   : > { %v82_v23 = vxor.u32 %v81_v21, %v80_v20 }
  0x36   : > { %v83_v24 = vmul.u32 3266489909, %v82_v23 }
  0x38   : > { %v84_v25 = vshrl.u32 %v83_v24, 16 }
  0x3a   : > { %v85_v26 = vxor.u32 %v84_v25, %v83_v24 }
  0x3c   : > { %v86_v27 = vshrl.u32 %v85_v26, 9 }
  0x3e   : > { %v87_v28 = vor.u32 1065353216, %v86_v27 }
  0x40   : > { %v152_v29 = vadd.f32 -0.99999994, %v87_v28 }
  0x42   : > { %197 = vlog2.f32 %v152_v29 }
  0x4f   : > { %v198_v30 = vpop.eup %197 }
  0x50   : > { %v91_v31 = vmul.f32 0.6931472, %v198_v30 }
  0x52   : > { %v92_v32 = vsub.f32 0.0, %v91_v31 }
  0x54   : > { %199 = vlog2.f32 %v92_v32 }
  0x61   : > { %v200_v33 = vpop.eup %199 }
  0x62   : > { %v94_v34 = vmul.f32 0.6931472, %v200_v33 }
  0x64   : > { %v95_v35 = vadd.f32 %v94_v34, %v73_v18  ;;  %64 = sbr.rel (!%p62_p10) target bundleno = 38 (0x26), region = 55 }
  0x66   : > { %vm96_vm1 = vcmp.lt.f32.partialorder %v95_v35, %v315_v11 }
  0x67   : > { %v98_v11 = vsel %vm96_vm1, %v95_v35, %v315_v11   ;;  %v100_v36 = vsel %vm96_vm1, %v99_v19, %v311_v10  }
  0x68   : > { %v310_v10 = vmov %v100_v36   ;;  %104 = vst [vmem:[#allocation9] sm:$0xff] (%p62_p10), %v100_v36 }
  0x69   :  { %244 = shalt.err (!%p241_p1)
}
  0x6a   :  { %114 = dma.vmem_to_hbm [thread:$0]  %s112_s5, 128, %s383_s3, [#allocation5]  }
  0x6b   :  { %s253_s11 = scalar_lea.vmem %s122_s7, 128  ;;  %p258_p3 = scmp.lt.s32.totalorder %s122_s7, %s122_s7 }
  0x6c   :  { %p254_p2 = scmp.ne.s32.totalorder %s122_s7, %s253_s11  ;;  %p259_p4 = scmp.lt.s32.totalorder %s253_s11, %s253_s11 }
  0x6e   :  { %p260_p5 = por %p259_p4, %p258_p3 }
  0x70   :  { %p261_p6 = pnand %p260_p5, %p254_p2 }
  0x72   :  { %264 = shalt.err (!%p261_p6)
}
  0x73   :  { %124 = dma.vmem_to_hbm [thread:$0]  %s122_s7, 128, %s384_s4, [#allocation10]  }
  0x74   :  { %297 = dma.done.wait [#allocation5], 128  }
  0x75   :  { %298 = vsyncadd [#allocation5], 4294967168 }
  0x76   :  { %299 = dma.done.wait [#allocation10], 128  }
  0x77   :  { %300 = vsyncadd [#allocation10], 4294967168 }
  0x78   :  { %131 = vsyncpa [#allocation4], 1 }
  0x79   :  { %132 = vsyncpa [#allocation5], 1 }
  0x7a   :  { %133 = vsyncpa [#allocation10], 1 }
  0x7b   :  { %134 = vsyncpa [#allocation6], 1 }

</bundles_post_ra>
